<compile_context>
chip_gen: v7x
topology: tpu7x:2x2x1
jax: 0.10.0
libtpu: 0.0.40
codegen_flags: <defaults>
</compile_context>

<pallas_src>
import jax
import jax.numpy as jnp
from jax.experimental import pallas as pl
from jax.experimental.pallas import tpu as pltpu


def _hbm_copy_kernel(x_hbm, o_hbm, sem):
    # One HBM->HBM DMA in native layout; wait for completion before returning.
    cp = pltpu.make_async_copy(x_hbm, o_hbm, sem)
    cp.start()
    cp.wait()


def _pallas_identity(t: jax.Array) -> jax.Array:
    """Materialize a fresh copy of `t` via a single HBM->HBM DMA (identity)."""
    if t.size == 0:
        return t
    nbytes = t.size * jnp.dtype(t.dtype).itemsize
    return pl.pallas_call(
        _hbm_copy_kernel,
        out_shape=jax.ShapeDtypeStruct(t.shape, t.dtype),
        in_specs=[pl.BlockSpec(memory_space=pl.ANY)],
        out_specs=pl.BlockSpec(memory_space=pl.ANY),
        scratch_shapes=[pltpu.SemaphoreType.DMA(())],
        cost_estimate=pl.CostEstimate(
            flops=0, transcendentals=0, bytes_accessed=2 * nbytes
        ),
    )(t)


class DictToTensorModel:
    """JAX/Pallas port of _DictToTensorModel.

    __init__(d): remembers the first key of the dict (same as the PyTorch module).
    forward(x):  returns x[self.key].
                 - materialize=False (default): zero-copy return (optimal; the op
                   is identity, so no kernel and no HBM traffic).
                 - materialize=True: returns a fresh buffer produced by a single
                   HBM->HBM DMA Pallas kernel (exactly 2n bytes of HBM traffic).
    """

    def __init__(self, d, materialize: bool = False):
        self.key = list(d.keys())[0]
        self.materialize = materialize

    def forward(self, x):
        t = x[self.key]
        if not self.materialize:
            return t  # zero-copy fast path
        return _pallas_identity(t)  # fresh-buffer path: one DMA

    __call__ = forward


if __name__ == "__main__":
    key = jax.random.PRNGKey(0)
    k1, k2, k3 = jax.random.split(key, 3)

    # Small NCHW tensor, consistent with typical conv-feature dict values.
    x_val = jax.random.normal(k1, (2, 4, 16, 16), dtype=jnp.float32)
    other = jax.random.normal(k2, (2, 8), dtype=jnp.float32)
    d = {"out": x_val, "aux": other}

    # Zero-copy default path (identity semantics, no kernel).
    model = DictToTensorModel(d)
    y0 = jax.block_until_ready(model(d))
    assert y0.shape == x_val.shape and y0.dtype == x_val.dtype
    assert bool(jnp.all(y0 == x_val))

    # Materialized path: exercises the Pallas HBM->HBM DMA kernel.
    model_copy = DictToTensorModel(d, materialize=True)
    y1 = jax.block_until_ready(model_copy(d))
    assert y1.shape == x_val.shape and y1.dtype == x_val.dtype
    assert bool(jnp.all(y1 == x_val))

    # Ragged / sub-32-bit dtype: handled natively by the DMA (no pad, no slice,
    # no relayout) — exact 2n-byte traffic regardless of alignment.
    x_bf16 = jax.random.normal(k3, (3, 5, 7), dtype=jnp.bfloat16)
    d2 = {"feat": x_bf16}
    model2 = DictToTensorModel(d2, materialize=True)
    y2 = jax.block_until_ready(model2(d2))
    assert y2.shape == x_bf16.shape and y2.dtype == x_bf16.dtype
    assert bool(jnp.all(y2 == x_bf16))

    print("KERNEL_OK")
</pallas_src>

<mosaic_0001>
module attributes {stable_mosaic.version = 11 : i64} {
  func.func @_hbm_copy_kernel(%arg0: memref<2x4x16x16xf32, #tpu.memory_space<any>>, %arg1: memref<2x4x16x16xf32, #tpu.memory_space<any>>, %arg2: memref<!tpu.dma_semaphore, #tpu.memory_space<semaphore_mem>>) attributes {dimension_semantics = [], scalar_prefetch = 0 : i64, scratch_operands = 1 : i64, tpu.core_type = #tpu.core_type<tc>} {
    tpu.enqueue_dma source(%arg0 : memref<2x4x16x16xf32, #tpu.memory_space<any>>) target(%arg1 : memref<2x4x16x16xf32, #tpu.memory_space<any>>) target_semaphore(%arg2 : memref<!tpu.dma_semaphore, #tpu.memory_space<semaphore_mem>>)
    tpu.wait_dma2 semaphore(%arg2 : memref<!tpu.dma_semaphore, #tpu.memory_space<semaphore_mem>>) src(%arg0 : memref<2x4x16x16xf32, #tpu.memory_space<any>>) dst(%arg1 : memref<2x4x16x16xf32, #tpu.memory_space<any>>)
    return
  }
}

</mosaic_0001>

<bundles_post_ra>
// kernel: tpu_custom_call.1
= control target key start
LH: loop header
LB: loop body
LE: loop exit
PB: predicated region body
PF: predicated region fallthrough
CT: control target
= control target key end

     0   :  { %s36_s6 = smov [#allocation2]   ;;  %s37_s7 = smov [#allocation3]   ;;  %s55_s0 = inlined_call_operand.hbm [shape: f32[2,4,16,16], index: 0, kind: input, shape index: {}]   ;;  %s56_s1 = inlined_call_operand.hbm [shape: f32[2,4,16,16], index: 1, kind: output, shape index: {}]  }
   0x1   :  { %s38_s8 = smov 0  }
   0x2   :  { %18 = dma.general %s55_s0, 2048, %s56_s1, %s36_s6, %s37_s7, [#allocation4], %s38_s8, 0  }
   0x3   :  { %34 = dma.done.wait [#allocation2], 2048 }
   0x4   :  { %35 = vsyncadd [#allocation2], 4294965248 }
   0x5   :  { %24 = vsyncmov [#allocation2] }
   0x8   :  { %s25_s13 = vpop.sfrf %24 }
   0x9   :  { %p30_p0 = scmp.ne.s32.totalorder %s25_s13, 0 }
   0xb   :  { %29 = shalt.err (%p30_p0)  }

</bundles_post_ra>
